<compile_context>
chip_gen: v5e
topology: v5e:2x2
jax: 0.10.0
libtpu: 0.0.40
codegen_flags: <defaults>
</compile_context>

<pallas_src>
import functools

import jax
import jax.numpy as jnp
from jax import lax
from jax.experimental import pallas as pl
from jax.experimental.pallas import tpu as pltpu

_EPS = 1e-5


# ---------------------------------------------------------------------------
# Helpers: hardware budget, lane packing, tile sizing
# ---------------------------------------------------------------------------

def _tpu_vmem_capacity():
    try:
        info = pltpu.get_tpu_info()
        cap = getattr(info, "vmem_capacity_bytes", None)
        if cap:
            return int(cap)
    except Exception:
        pass
    return 64 << 20  # conservative default (v7x per-TC VMEM)


def _round_up(a, b):
    return ((a + b - 1) // b) * b


def _pack_factor(n_rows, d):
    """k rows packed along lanes so the lane width k*d approaches 128."""
    if d >= 128 or 128 % d != 0:
        return 1
    k = 128 // d                       # power of two (d divides 128)
    while k > 1 and n_rows % k != 0:
        k //= 2
    return k


def _choose_tile_m(n_rows, d_p, itemsize, budget_bytes):
    """Largest multiple-of-8 row tile: ~4 live [tile, d_p] buffers in budget."""
    bytes_per_row = 4 * d_p * max(int(itemsize), 4)
    tile = max(8, budget_bytes // bytes_per_row)
    tile = min(tile, _round_up(n_rows, 8))
    return max(8, (tile // 8) * 8)


def _lane_fold(s, d, k):
    """Sum the k packed segments of a [1, k*d] row; result replicated per seg."""
    if k == 1:
        return s
    out = s
    for i in range(1, k):
        out = out + pltpu.roll(s, shift=i * d, axis=1)   # XLU, cheap
    return out


# ---------------------------------------------------------------------------
# BatchNorm1d kernels (training-mode statistics)
# ---------------------------------------------------------------------------

def _bn_fused_kernel(x_ref, gb_ref, o_ref, *, inv_n, d, k):
    """Whole (packed) x resident: sums -> mean -> centered var -> normalize."""
    x = x_ref[...].astype(jnp.float32)                       # [R, k*d]
    mean = _lane_fold(jnp.sum(x, axis=0, keepdims=True), d, k) * inv_n
    xc = x - mean
    var = _lane_fold(jnp.sum(xc * xc, axis=0, keepdims=True), d, k) * inv_n
    rstd = lax.rsqrt(var + _EPS)
    scale = gb_ref[0:1, :] * rstd
    o_ref[...] = (xc * scale + gb_ref[1:2, :]).astype(o_ref.dtype)


def _bn_stats_kernel(x_ref, stats_ref, *, n_rows, blocks_per_split, mask_rows):
    """Accumulate per-lane [sum; sum-of-squares] over row tiles (one split)."""
    @pl.when(pl.program_id(1) == 0)
    def _():
        stats_ref[...] = jnp.zeros_like(stats_ref)

    x = x_ref[...].astype(jnp.float32)
    if mask_rows:
        block = pl.program_id(0) * blocks_per_split + pl.program_id(1)
        row0 = block * x.shape[0]
        valid = (lax.broadcasted_iota(jnp.int32, x.shape, 0) + row0) < n_rows
        x = jnp.where(valid, x, 0.0)
    stats_ref[0:1, :] += jnp.sum(x, axis=0, keepdims=True)
    stats_ref[1:2, :] += jnp.sum(x * x, axis=0, keepdims=True)


def _bn_apply_kernel(x_ref, ss_ref, o_ref):
    """y = x * scale + shift (scale/shift precomputed in the wrapper)."""
    x = x_ref[...].astype(jnp.float32)
    o_ref[...] = (x * ss_ref[0:1, :] + ss_ref[1:2, :]).astype(o_ref.dtype)


def batch_norm_forward(x, gamma, beta, *, tile_m=None, force_two_pass=False):
    n, d = x.shape
    itemsize = jnp.dtype(x.dtype).itemsize
    cap = _tpu_vmem_capacity()

    k = _pack_factor(n, d)
    dp, rp = d * k, n // k
    x_p = x.reshape(rp, dp)                                    # free (row-major)

    gamma32 = gamma.astype(jnp.float32).reshape(-1)
    beta32 = beta.astype(jnp.float32).reshape(-1)

    # ---- fused single-pass path (x + y + temps fit in VMEM) ----------------
    fused_bytes = n * d * (2 * itemsize + 8)                   # in + out + 2 f32 temps
    if (not force_two_pass) and fused_bytes <= cap // 4:
        gb = jnp.stack([jnp.tile(gamma32, (k,)), jnp.tile(beta32, (k,))])  # (2, dp)
        y_p = pl.pallas_call(
            functools.partial(_bn_fused_kernel, inv_n=1.0 / n, d=d, k=k),
            out_shape=jax.ShapeDtypeStruct((rp, dp), x.dtype),
            grid=(1,),
            in_specs=[pl.BlockSpec((rp, dp), lambda i: (0, 0)),
                      pl.BlockSpec((2, dp), lambda i: (0, 0))],
            out_specs=pl.BlockSpec((rp, dp), lambda i: (0, 0)),
            compiler_params=pltpu.CompilerParams(
                dimension_semantics=("arbitrary",),
                vmem_limit_bytes=min(cap * 3 // 4, 96 << 20)),
        )(x_p, gb)
        return y_p.reshape(n, d)

    # ---- two-pass path (large N): stats sweep + affine apply ---------------
    vlimit = min(48 << 20, cap // 2)
    tile = tile_m if tile_m is not None else _choose_tile_m(rp, dp, itemsize, cap // 4)
    tile = max(8, (tile // 8) * 8)
    n_blocks = pl.cdiv(rp, tile)
    n_split = 2 if (n_blocks % 2 == 0 and n_blocks >= 2) else 1   # megacore on v7x
    bps = n_blocks // n_split

    partials = pl.pallas_call(
        functools.partial(_bn_stats_kernel, n_rows=rp, blocks_per_split=bps,
                          mask_rows=(rp % tile != 0)),
        out_shape=jax.ShapeDtypeStruct((n_split, 2, dp), jnp.float32),
        grid=(n_split, bps),
        in_specs=[pl.BlockSpec((tile, dp), lambda c, i: (c * bps + i, 0))],
        out_specs=pl.BlockSpec((None, 2, dp), lambda c, i: (c, 0, 0)),
        compiler_params=pltpu.CompilerParams(
            dimension_semantics=("parallel", "arbitrary"),
            vmem_limit_bytes=vlimit),
    )(x_p)

    # Fold stats -> (scale, shift) once (tiny XLA op), grid-invariant.
    sums = partials.sum(axis=0)                                # (2, dp)
    if k > 1:
        sums = sums.reshape(2, k, d).sum(axis=1)               # (2, d)
    mean = sums[0] * (1.0 / n)
    # TODO(synk): E[x^2]-mean^2 can lose precision when |mean| >> std; the
    # fused path above uses a centered variance and avoids this.
    var = jnp.maximum(sums[1] * (1.0 / n) - mean * mean, 0.0)
    rstd = lax.rsqrt(var + _EPS)
    scale = gamma32 * rstd
    shift = beta32 - mean * scale
    ss = jnp.stack([jnp.tile(scale, (k,)), jnp.tile(shift, (k,))])   # (2, dp)

    y_p = pl.pallas_call(
        _bn_apply_kernel,
        out_shape=jax.ShapeDtypeStruct((rp, dp), x.dtype),
        grid=(n_blocks,),
        in_specs=[pl.BlockSpec((tile, dp), lambda i: (i, 0)),
                  pl.BlockSpec((2, dp), lambda i: (0, 0))],
        out_specs=pl.BlockSpec((tile, dp), lambda i: (i, 0)),
        compiler_params=pltpu.CompilerParams(
            dimension_semantics=("parallel",),
            vmem_limit_bytes=vlimit),
    )(x_p, ss)
    return y_p.reshape(n, d)


# ---------------------------------------------------------------------------
# LayerNorm kernels (per-row statistics)
# ---------------------------------------------------------------------------

def _ln_packed_kernel(x_ref, gb_ref, seg_ref, o_ref, *, inv_d):
    """Lane-packed rows; per-segment (per original row) sums via block-diag MXU."""
    x = x_ref[...].astype(jnp.float32)                         # [T, k*d]
    seg = seg_ref[...]                                         # [k*d, k*d] 0/1
    mean = jnp.dot(x, seg, preferred_element_type=jnp.float32,
                   precision=lax.Precision.HIGHEST) * inv_d
    xc = x - mean
    var = jnp.dot(xc * xc, seg, preferred_element_type=jnp.float32,
                  precision=lax.Precision.HIGHEST) * inv_d
    rstd = lax.rsqrt(var + _EPS)
    o_ref[...] = (xc * rstd * gb_ref[0:1, :] + gb_ref[1:2, :]).astype(o_ref.dtype)


def _ln_kernel(x_ref, gb_ref, o_ref):
    x = x_ref[...].astype(jnp.float32)
    mean = jnp.mean(x, axis=-1, keepdims=True)
    xc = x - mean
    var = jnp.mean(xc * xc, axis=-1, keepdims=True)
    o_ref[...] = (xc * lax.rsqrt(var + _EPS) * gb_ref[0:1, :]
                  + gb_ref[1:2, :]).astype(o_ref.dtype)


def layer_norm_forward(x, gamma, beta, *, tile_m=None):
    n, d = x.shape
    itemsize = jnp.dtype(x.dtype).itemsize
    cap = _tpu_vmem_capacity()
    vlimit = min(48 << 20, cap // 2)

    k = _pack_factor(n, d)
    dp, rp = d * k, n // k
    x_p = x.reshape(rp, dp)                                    # free (row-major)

    gamma32 = gamma.astype(jnp.float32).reshape(-1)
    beta32 = beta.astype(jnp.float32).reshape(-1)
    gb = jnp.stack([jnp.tile(gamma32, (k,)), jnp.tile(beta32, (k,))])  # (2, dp)

    tile = tile_m if tile_m is not None else _choose_tile_m(rp, dp, itemsize, cap // 4)
    tile = max(8, (tile // 8) * 8)
    n_blocks = pl.cdiv(rp, tile)

    if k > 1:
        lane = jnp.arange(dp, dtype=jnp.int32)
        seg = (lane[:, None] // d == lane[None, :] // d).astype(jnp.float32)
        y_p = pl.pallas_call(
            functools.partial(_ln_packed_kernel, inv_d=1.0 / d),
            out_shape=jax.ShapeDtypeStruct((rp, dp), x.dtype),
            grid=(n_blocks,),
            in_specs=[pl.BlockSpec((tile, dp), lambda i: (i, 0)),
                      pl.BlockSpec((2, dp), lambda i: (0, 0)),
                      pl.BlockSpec((dp, dp), lambda i: (0, 0))],
            out_specs=pl.BlockSpec((tile, dp), lambda i: (i, 0)),
            compiler_params=pltpu.CompilerParams(
                dimension_semantics=("parallel",), vmem_limit_bytes=vlimit),
        )(x_p, gb, seg)
    else:
        y_p = pl.pallas_call(
            _ln_kernel,
            out_shape=jax.ShapeDtypeStruct((rp, dp), x.dtype),
            grid=(n_blocks,),
            in_specs=[pl.BlockSpec((tile, dp), lambda i: (i, 0)),
                      pl.BlockSpec((2, dp), lambda i: (0, 0))],
            out_specs=pl.BlockSpec((tile, dp), lambda i: (i, 0)),
            compiler_params=pltpu.CompilerParams(
                dimension_semantics=("parallel",), vmem_limit_bytes=vlimit),
        )(x_p, gb)
    return y_p.reshape(n, d)


# ---------------------------------------------------------------------------
# Module-level dispatch mirroring Normalize.forward
# ---------------------------------------------------------------------------

def normalize_forward(x, params=None, *, dim=None, norm="batch", tile_m=None):
    if dim is None or norm == "none":
        return x
    if norm == "batch":
        return batch_norm_forward(x, params["gamma"], params["beta"], tile_m=tile_m)
    if norm == "layer":
        return layer_norm_forward(x, params["gamma"], params["beta"], tile_m=tile_m)
    return x


if __name__ == "__main__":
    key = jax.random.PRNGKey(0)
    kx, kg, kb, kx2 = jax.random.split(key, 4)

    n, dim = 256, 32
    x = jax.random.normal(kx, (n, dim), jnp.float32)
    # PyTorch inits gamma=1, beta=0; perturb slightly to exercise the affine path.
    gamma = 1.0 + 0.1 * jax.random.normal(kg, (dim,), jnp.float32)
    beta = 0.1 * jax.random.normal(kb, (dim,), jnp.float32)
    params = dict(gamma=gamma, beta=beta)

    # --- BatchNorm, fused single-pass path (default for small x) -------------
    out = jax.block_until_ready(normalize_forward(x, params, dim=dim, norm="batch"))
    mean = x.mean(axis=0)
    var = x.var(axis=0)
    ref_bn = (x - mean) / jnp.sqrt(var + _EPS) * gamma + beta
    assert out.shape == (n, dim)
    assert jnp.allclose(out, ref_bn, atol=1e-4, rtol=1e-4), "fused batch-norm mismatch"

    # --- BatchNorm, forced two-pass path with a ragged row count -------------
    # (exercises in-kernel row masking, split stats reduction, partial blocks)
    n2 = 250
    x2 = jax.random.normal(kx2, (n2, dim), jnp.float32)
    out2 = jax.block_until_ready(
        batch_norm_forward(x2, gamma, beta, tile_m=24, force_two_pass=True))
    mean2 = x2.mean(axis=0)
    var2 = x2.var(axis=0)
    ref2 = (x2 - mean2) / jnp.sqrt(var2 + _EPS) * gamma + beta
    assert out2.shape == (n2, dim)
    assert jnp.allclose(out2, ref2, atol=1e-4, rtol=1e-4), "two-pass batch-norm mismatch"

    # --- LayerNorm (lane-packed segmented reduction) --------------------------
    out_ln = jax.block_until_ready(normalize_forward(x, params, dim=dim, norm="layer"))
    mean_l = x.mean(axis=-1, keepdims=True)
    var_l = x.var(axis=-1, keepdims=True)
    ref_ln = (x - mean_l) / jnp.sqrt(var_l + _EPS) * gamma + beta
    assert jnp.allclose(out_ln, ref_ln, atol=1e-3, rtol=1e-3), "layer-norm mismatch"

    # --- identity path --------------------------------------------------------
    assert normalize_forward(x, params, dim=None) is x

    print("KERNEL_OK")
</pallas_src>

<mosaic_0001>
module attributes {stable_mosaic.version = 11 : i64} {
  func.func @_bn_fused_kernel(%arg0: i32, %arg1: memref<64x128xf32, #tpu.memory_space<vmem>>, %arg2: memref<2x128xf32, #tpu.memory_space<vmem>>, %arg3: memref<64x128xf32, #tpu.memory_space<vmem>>) attributes {dimension_semantics = [#tpu.dimension_semantics<arbitrary>], iteration_bounds = array<i64: 1>, scalar_prefetch = 0 : i64, scratch_operands = 0 : i64, tpu.core_type = #tpu.core_type<tc>, window_params = [{pipeline_mode = #tpu.pipeline_mode<synchronous>, transform_indices = @transform_0, window_bounds = array<i64: 64, 128>}, {pipeline_mode = #tpu.pipeline_mode<synchronous>, transform_indices = @transform_1, window_bounds = array<i64: 2, 128>}, {pipeline_mode = #tpu.pipeline_mode<synchronous>, transform_indices = @transform_2, window_bounds = array<i64: 64, 128>}]} {
    %c0 = arith.constant 0 : index
    %c0_0 = arith.constant 0 : index
    %0 = vector.load %arg1[%c0, %c0_0] : memref<64x128xf32, #tpu.memory_space<vmem>>, vector<64x128xf32>
    %cst = arith.constant dense<0.000000e+00> : vector<128xf32>
    %1 = vector.multi_reduction <add>, %0, %cst [0] : vector<64x128xf32> to vector<128xf32>
    %2 = vector.shape_cast %1 : vector<128xf32> to vector<1x128xf32>
    %c32_i32 = arith.constant 32 : i32
    %3 = tpu.dynamic_rotate %2 by %c32_i32 dim 1 : vector<1x128xf32>, i32 -> vector<1x128xf32>
    %4 = arith.addf %2, %3 : vector<1x128xf32>
    %c64_i32 = arith.constant 64 : i32
    %5 = tpu.dynamic_rotate %2 by %c64_i32 dim 1 : vector<1x128xf32>, i32 -> vector<1x128xf32>
    %6 = arith.addf %4, %5 : vector<1x128xf32>
    %c96_i32 = arith.constant 96 : i32
    %7 = tpu.dynamic_rotate %2 by %c96_i32 dim 1 : vector<1x128xf32>, i32 -> vector<1x128xf32>
    %8 = arith.addf %6, %7 : vector<1x128xf32>
    %cst_1 = arith.constant 3.906250e-03 : f32
    %9 = vector.broadcast %cst_1 : f32 to vector<1x128xf32>
    %10 = arith.mulf %8, %9 : vector<1x128xf32>
    %11 = vector.broadcast %10 : vector<1x128xf32> to vector<64x128xf32>
    %12 = arith.subf %0, %11 : vector<64x128xf32>
    %13 = arith.mulf %12, %12 : vector<64x128xf32>
    %cst_2 = arith.constant dense<0.000000e+00> : vector<128xf32>
    %14 = vector.multi_reduction <add>, %13, %cst_2 [0] : vector<64x128xf32> to vector<128xf32>
    %15 = vector.shape_cast %14 : vector<128xf32> to vector<1x128xf32>
    %c32_i32_3 = arith.constant 32 : i32
    %16 = tpu.dynamic_rotate %15 by %c32_i32_3 dim 1 : vector<1x128xf32>, i32 -> vector<1x128xf32>
    %17 = arith.addf %15, %16 : vector<1x128xf32>
    %c64_i32_4 = arith.constant 64 : i32
    %18 = tpu.dynamic_rotate %15 by %c64_i32_4 dim 1 : vector<1x128xf32>, i32 -> vector<1x128xf32>
    %19 = arith.addf %17, %18 : vector<1x128xf32>
    %c96_i32_5 = arith.constant 96 : i32
    %20 = tpu.dynamic_rotate %15 by %c96_i32_5 dim 1 : vector<1x128xf32>, i32 -> vector<1x128xf32>
    %21 = arith.addf %19, %20 : vector<1x128xf32>
    %cst_6 = arith.constant 3.906250e-03 : f32
    %22 = vector.broadcast %cst_6 : f32 to vector<1x128xf32>
    %23 = arith.mulf %21, %22 : vector<1x128xf32>
    %cst_7 = arith.constant 9.99999974E-6 : f32
    %24 = vector.broadcast %cst_7 : f32 to vector<1x128xf32>
    %25 = arith.addf %23, %24 : vector<1x128xf32>
    %26 = math.rsqrt %25 : vector<1x128xf32>
    %c0_8 = arith.constant 0 : index
    %c0_9 = arith.constant 0 : index
    %27 = vector.load %arg2[%c0_8, %c0_9] : memref<2x128xf32, #tpu.memory_space<vmem>>, vector<1x128xf32>
    %28 = arith.mulf %27, %26 : vector<1x128xf32>
    %29 = vector.broadcast %28 : vector<1x128xf32> to vector<64x128xf32>
    %30 = arith.mulf %12, %29 : vector<64x128xf32>
    %c1 = arith.constant 1 : index
    %c0_10 = arith.constant 0 : index
    %31 = vector.load %arg2[%c1, %c0_10] : memref<2x128xf32, #tpu.memory_space<vmem>>, vector<1x128xf32>
    %32 = vector.broadcast %31 : vector<1x128xf32> to vector<64x128xf32>
    %33 = arith.addf %30, %32 : vector<64x128xf32>
    %c0_11 = arith.constant 0 : index
    %c0_12 = arith.constant 0 : index
    %34 = vector.load %arg3[%c0_11, %c0_12] : memref<64x128xf32, #tpu.memory_space<vmem>>, vector<64x128xf32>
    tpu.vector_store %arg3[%c0_11, %c0_12], %33 {strides = array<i32>} : memref<64x128xf32, #tpu.memory_space<vmem>>, vector<64x128xf32>,
    return
  }
  func.func @transform_0(%arg0: i32) -> (i32, i32) {
    %c0_i32 = arith.constant 0 : i32
    %c0_i32_0 = arith.constant 0 : i32
    %c0_i32_1 = arith.constant 0 : i32
    return %c0_i32, %c0_i32_0 : i32, i32
  }
  func.func @transform_1(%arg0: i32) -> (i32, i32) {
    %c0_i32 = arith.constant 0 : i32
    %c0_i32_0 = arith.constant 0 : i32
    %c0_i32_1 = arith.constant 0 : i32
    return %c0_i32, %c0_i32_0 : i32, i32
  }
  func.func @transform_2(%arg0: i32) -> (i32, i32) {
    %c0_i32 = arith.constant 0 : i32
    %c0_i32_0 = arith.constant 0 : i32
    %c0_i32_1 = arith.constant 0 : i32
    return %c0_i32, %c0_i32_0 : i32, i32
  }
}

</mosaic_0001>

<bundles_post_ra>
// kernel: tpu_custom_call.1
= control target key start
LH: loop header
LB: loop body
LE: loop exit
PB: predicated region body
PF: predicated region fallthrough
CT: control target
= control target key end

     0   :  { %7 = vsyncpa [#allocation3], 0  ;;  %s306_s0 = inlined_call_operand.hbm [shape: f32[64,128], index: 0, kind: input, shape index: {}]   ;;  %s307_s1 = inlined_call_operand.hbm [shape: f32[2,128], index: 1, kind: input, shape index: {}]   ;;  %s308_s2 = inlined_call_operand.hbm [shape: f32[64,128], index: 2, kind: output, shape index: {}]  }
   0x1   :  { %8 = vsyncpa [#allocation6], 0 }
   0x2   :  { %9 = vsyncpa [#allocation4], 0  ;;  %s14_s11 = sshll.u32 %s306_s0, 4  ;;  %s262_s12 = smov [#allocation2]   ;;  %s15_s11 = int_to_ptr.hbm [resolvable:$true] %s14_s11 }
   0x3   :  { %s16_s13 = sshll.u32 %s262_s12, 4  ;;  %s28_s16 = sshll.u32 %s307_s1, 4  ;;  %s17_s13 = int_to_ptr.vmem [resolvable:$true] %s16_s13  ;;  %s29_s16 = int_to_ptr.hbm [resolvable:$true] %s28_s16 }
   0x4   :  { %s263_s17 = smov 128   ;;  %s264_s18 = smov 8  }
   0x5   :  { %22 = dma.hbm_to_vmem [thread:$0]  %s15_s11, 1024, %s17_s13, [#allocation3], %s263_s17, %s263_s17, %s264_s18  }
   0x6   :  { %s265_s19 = smov [#allocation5]  }
   0x7   :  { %s30_s20 = sshll.u32 %s265_s19, 4  ;;  %s31_s20 = int_to_ptr.vmem [resolvable:$true] %s30_s20 }
   0x8   :  { %33 = dma.hbm_to_vmem [thread:$0]  %s29_s16, 32, %s31_s20, [#allocation6]  }
   0x9   :  { %256 = dma.done.wait [#allocation3], 1024  }
   0xa   :  { %257 = vsyncadd [#allocation3], 4294966272 }
   0xb   :  { %258 = dma.done.wait [#allocation6], 32  }
   0xc   :  { %259 = vsyncadd [#allocation6], 4294967264  ;;  %v42_v0 = vld [vmem:[#allocation2] sm:$0xff]  ;;  %v43_v1 = vld [vmem:[#allocation2 + $0x8] sm:$0xff]  ;;  %s266_s0 = smov 32   ;;  %s267_s1 = smov 96  }
   0xd   :  { %v44_v2 = vld [vmem:[#allocation2 + $0x10] sm:$0xff]  ;;  %v50_v3 = vadd.f32 %v43_v1, %v42_v0  ;;  %v45_v4 = vld [vmem:[#allocation2 + $0x18] sm:$0xff]  ;;  %v46_v6 = vld [vmem:[#allocation2 + $0x20] sm:$0xff]  ;;  %s268_s21 = smov 64   ;;  %s269_s22 = smov [#allocation7]  }
   0xe   :  { %v47_v8 = vld [vmem:[#allocation2 + $0x28] sm:$0xff]  ;;  %v48_v10 = vld [vmem:[#allocation2 + $0x30] sm:$0xff]  ;;  %v49_v12 = vld [vmem:[#allocation2 + $0x38] sm:$0xff]  ;;  %s157_s23 = sshll.u32 %s269_s22, 4  ;;  %s159_s26 = sshll.u32 %s308_s2, 4  ;;  %s158_s23 = int_to_ptr.vmem [resolvable:$true] %s157_s23  ;;  %s160_s26 = int_to_ptr.hbm [resolvable:$true] %s159_s26 }
   0xf   :  { %v51_v5 = vadd.f32 %v50_v3, %v44_v2 }
  0x11   :  { %v52_v7 = vadd.f32 %v51_v5, %v45_v4 }
  0x13   :  { %v53_v9 = vadd.f32 %v52_v7, %v46_v6  ;;  %v124_v7 = vld [vmem:[#allocation5] sm:$0x1] }
  0x15   :  { %v54_v11 = vadd.f32 %v53_v9, %v47_v8 }
  0x17   :  { %v55_v13 = vadd.f32 %v54_v11, %v48_v10 }
  0x19   :  { %v56_v14 = vadd.f32 %v55_v13, %v49_v12 }
  0x1b   :  { %v57_v15 = vrot.slane %v56_v14, 4 }
  0x1d   :  { %v58_v16 = vadd.f32 %v57_v15, %v56_v14 }
  0x1f   :  { %v59_v17 = vrot.slane %v58_v16, 2 }
  0x21   :  { %v60_v18 = vadd.f32 %v59_v17, %v58_v16 }
  0x23   :  { %v61_v19 = vrot.slane %v60_v18, 1 }
  0x25   :  { %v62_v20 = vadd.f32 %v61_v19, %v60_v18 }
  0x27   :  { %63 = vrot.lane.b32.xlu0 %v62_v20, %s266_s0  ;;  %69 = vrot.lane.b32.xlu1 %v62_v20, %s267_s1 }
  0x2f   :  { %66 = vrot.lane.b32.xlu0 %v62_v20, %s268_s21 }
  0x99   :  { %v64_v21 = vpop.permute.xlu0 %63  ;;  %v70_v24 = vpop.permute.xlu1 %69 }
  0x9a   :  { %v65_v22 = vadd.f32 %v64_v21, %v62_v20 }
  0xa1   :  { %v67_v23 = vpop.permute.xlu0 %66 }
  0xa2   :  { %v68_v25 = vadd.f32 %v67_v23, %v65_v22 }
  0xa4   :  { %v71_v26 = vadd.f32 %v70_v24, %v68_v25 }
  0xa6   :  { %v72_v27 = vmul.f32 0.00390625, %v71_v26 }
  0xa8   :  { %v73_v28 = vperm.slane %v72_v27, 0 }
  0xaa   :  { %v74_v29 = vsub.f32 %v42_v0, %v73_v28  ;;  %v75_v30 = vsub.f32 %v43_v1, %v73_v28  ;;  %v76_v31 = vsub.f32 %v44_v2, %v73_v28  ;;  %v77_v32 = vsub.f32 %v45_v4, %v73_v28 }
  0xab   :  { %v78_v35 = vsub.f32 %v46_v6, %v73_v28  ;;  %v79_v38 = vsub.f32 %v47_v8, %v73_v28  ;;  %v80_v41 = vsub.f32 %v48_v10, %v73_v28  ;;  %v81_v44 = vsub.f32 %v49_v12, %v73_v28  ;;  %v181_v12 = vld [vmem:[#allocation5 + $0x1] ss:$0 sm:$0xff] }
  0xac   :  { %v82_v33 = vmul.f32 %v74_v29, %v74_v29  ;;  %v83_v34 = vmul.f32 %v75_v30, %v75_v30  ;;  %v84_v36 = vmul.f32 %v76_v31, %v76_v31  ;;  %v85_v39 = vmul.f32 %v77_v32, %v77_v32 }
  0xad   :  { %v86_v42 = vmul.f32 %v78_v35, %v78_v35  ;;  %v87_v45 = vmul.f32 %v79_v38, %v79_v38  ;;  %v88_v47 = vmul.f32 %v80_v41, %v80_v41  ;;  %v89_v49 = vmul.f32 %v81_v44, %v81_v44 }
  0xae   :  { %v90_v37 = vadd.f32 %v83_v34, %v82_v33 }
  0xb0   :  { %v91_v40 = vadd.f32 %v90_v37, %v84_v36 }
  0xb2   :  { %v92_v43 = vadd.f32 %v91_v40, %v85_v39 }
  0xb4   :  { %v93_v46 = vadd.f32 %v92_v43, %v86_v42 }
  0xb6   :  { %v94_v48 = vadd.f32 %v93_v46, %v87_v45 }
  0xb8   :  { %v95_v50 = vadd.f32 %v94_v48, %v88_v47 }
  0xba   :  { %v96_v51 = vadd.f32 %v95_v50, %v89_v49 }
  0xbc   :  { %v97_v52 = vrot.slane %v96_v51, 4 }
  0xbe   :  { %v98_v53 = vadd.f32 %v97_v52, %v96_v51 }
  0xc0   :  { %v99_v54 = vrot.slane %v98_v53, 2 }
  0xc2   :  { %v100_v55 = vadd.f32 %v99_v54, %v98_v53 }
  0xc4   :  { %v101_v56 = vrot.slane %v100_v55, 1 }
  0xc6   :  { %v102_v57 = vadd.f32 %v101_v56, %v100_v55 }
  0xc8   :  { %106 = vrot.lane.b32.xlu2 %v102_v57, %s268_s21  ;;  %103 = vrot.lane.b32.xlu1 %v102_v57, %s266_s0 }
  0xd0   :  { %109 = vrot.lane.b32.xlu2 %v102_v57, %s267_s1 }
 0x122   :  { %v107_v58 = vpop.permute.xlu2 %106 }
 0x12a   :  { %v110_v62 = vpop.permute.xlu2 %109 }
 0x13a   :  { %v104_v59 = vpop.permute.xlu1 %103 }
 0x13b   :  { %v105_v60 = vadd.f32 %v104_v59, %v102_v57 }
 0x13d   :  { %v108_v61 = vadd.f32 %v107_v58, %v105_v60 }
 0x13f   :  { %v111_v63 = vadd.f32 %v110_v62, %v108_v61 }
 0x141   :  { %v112_v0 = vmul.f32 0.00390625, %v111_v63 }
 0x143   :  { %v113_v1 = vadd.f32 1e-05, %v112_v0 }
 0x145   :  { %182 = vrsqrt.f32 %v113_v1  ;;  %vm120_vm1 = vweird.f32 %v113_v1 }
 0x14b   :  { %v183_v2 = vpop.eup %182 }
 0x14c   :  { %v115_v3 = vmul.f32 %v183_v2, %v113_v1  ;;  %vm121_vm0 = vweird.f32 %v183_v2 }
 0x14d   :  { %vm122_vm2 = vmor %vm120_vm1, %vm121_vm0 }
 0x14e   :  { %v116_v4 = vmul.f32 %v183_v2, %v115_v3 }
 0x150   :  { %v117_v5 = vmul.f32 0.5, %v116_v4 }
 0x152   :  { %v118_v6 = vsub.f32 1.5, %v117_v5 }
 0x154   :  { %v119_v8 = vmul.f32 %v183_v2, %v118_v6 }
 0x156   :  { %v123_v9 = vsel %vm122_vm2, %v183_v2, %v119_v8 }
 0x157   :  { %v125_v10 = vmul.f32 %v124_v7, %v123_v9 }
 0x159   :  { %v126_v11 = vperm.slane %v125_v10, 0 }
 0x15b   :  { %v127_v13 = vmul.f32 %v126_v11, %v74_v29  ;;  %v128_v14 = vmul.f32 %v126_v11, %v75_v30  ;;  %v129_v15 = vmul.f32 %v126_v11, %v76_v31  ;;  %v130_v16 = vmul.f32 %v126_v11, %v77_v32 }
 0x15c   :  { %v131_v17 = vmul.f32 %v126_v11, %v78_v35  ;;  %v132_v18 = vmul.f32 %v126_v11, %v79_v38  ;;  %v133_v19 = vmul.f32 %v126_v11, %v80_v41  ;;  %v134_v23 = vmul.f32 %v126_v11, %v81_v44 }
 0x15d   :  { %v137_v20 = vadd.f32 %v181_v12, %v127_v13  ;;  %v138_v21 = vadd.f32 %v181_v12, %v128_v14  ;;  %v139_v22 = vadd.f32 %v181_v12, %v129_v15  ;;  %v140_v24 = vadd.f32 %v181_v12, %v130_v16 }
 0x15e   :  { %v141_v25 = vadd.f32 %v181_v12, %v131_v17  ;;  %v142_v26 = vadd.f32 %v181_v12, %v132_v18  ;;  %v143_v27 = vadd.f32 %v181_v12, %v133_v19  ;;  %v144_v28 = vadd.f32 %v181_v12, %v134_v23 }
 0x15f   :  { %145 = vst [vmem:[#allocation7] sm:$0xff] %v137_v20 }
 0x160   :  { %146 = vst [vmem:[#allocation7 + $0x8] sm:$0xff] %v138_v21 }
 0x161   :  { %147 = vst [vmem:[#allocation7 + $0x10] sm:$0xff] %v139_v22 }
 0x162   :  { %148 = vst [vmem:[#allocation7 + $0x18] sm:$0xff] %v140_v24 }
 0x163   :  { %149 = vst [vmem:[#allocation7 + $0x20] sm:$0xff] %v141_v25 }
 0x164   :  { %150 = vst [vmem:[#allocation7 + $0x28] sm:$0xff] %v142_v26 }
 0x165   :  { %151 = vst [vmem:[#allocation7 + $0x30] sm:$0xff] %v143_v27 }
 0x166   :  { %152 = vst [vmem:[#allocation7 + $0x38] sm:$0xff] %v144_v28 }
 0x167   :  { %165 = dma.vmem_to_hbm [thread:$0]  %s158_s23, 1024, %s160_s26, [#allocation4], %s263_s17, %s263_s17, %s264_s18  }
 0x168   :  { %260 = dma.done.wait [#allocation4], 1024  }
 0x169   :  { %261 = vsyncadd [#allocation4], 4294966272 }
 0x16a   :  { %170 = vsyncpa [#allocation3], 1 }
 0x16b   :  { %171 = vsyncpa [#allocation6], 1 }
 0x16c   :  { %172 = vsyncpa [#allocation4], 1 }

</bundles_post_ra>
